<compile_context>
chip_gen: v5e
topology: v5e:2x2
jax: 0.10.0
libtpu: 0.0.40
codegen_flags: <defaults>
</compile_context>

<pallas_src>
import math

import jax
import jax.numpy as jnp
from jax.experimental import pallas as pl
from jax.experimental.pallas import tpu as pltpu

_LANE_CANDIDATES = (2048, 1024, 512, 256, 128)   # lane-dense widths (mult. of 128)
_FALLBACK_LANE = 512
_TARGET_BLOCK_BYTES = 6 * 1024 * 1024            # ~6 MiB blocks; 4 bufs ~= 24 MiB VMEM
_MIN_BLOCK_BYTES = 1 * 1024 * 1024               # don't shrink below ~1 MiB per block
_MIN_STEPS = 8                                   # >= 4 steps per core on v7x (2 TCs)


def _h_sigmoid_kernel(x_ref, o_ref):
    x = x_ref[...]
    # relu6(x + 3) / 6 == clamp(x + 3, 0, 6) * (1/6)   (multiply, not divide)
    o_ref[...] = (jnp.clip(x + 3.0, 0.0, 6.0) * (1.0 / 6.0)).astype(o_ref.dtype)


def _round_up(a, b):
    return ((a + b - 1) // b) * b


def _vmem_capacity_bytes():
    try:
        return int(pltpu.get_tpu_info().vmem_capacity_bytes)
    except Exception:
        return 64 * 1024 * 1024   # conservative: v7x per-TensorCore VMEM


def _launch(x2, dtype):
    rows, lane = x2.shape
    itemsize = jnp.dtype(dtype).itemsize
    row_bytes = lane * itemsize
    # dtype-dependent sublane multiple (packing): 8 f32, 16 bf16, 32 int8/fp8
    sub = max(8, 32 // itemsize)

    vmem_cap = _vmem_capacity_bytes()
    block_bytes = min(_TARGET_BLOCK_BYTES, vmem_cap // 10)

    # Cap tile rows by the block byte budget (sublane-aligned).
    bytes_cap = max(sub, (block_bytes // row_bytes) // sub * sub)
    # Keep enough grid steps for software pipelining / both v7x cores, as long
    # as each block stays >= ~1 MiB.
    total_bytes = rows * row_bytes
    desired_steps = max(1, min(_MIN_STEPS, total_bytes // _MIN_BLOCK_BYTES))
    steps_cap = _round_up(pl.cdiv(rows, desired_steps), sub)

    tile_r = min(bytes_cap, steps_cap)
    if tile_r >= rows:
        tile_r = rows                     # full-extent block (always legal)

    grid = (pl.cdiv(rows, tile_r),)       # ragged last row-block is masked by Pallas

    return pl.pallas_call(
        _h_sigmoid_kernel,
        out_shape=jax.ShapeDtypeStruct((rows, lane), dtype),
        grid_spec=pltpu.PrefetchScalarGridSpec(
            num_scalar_prefetch=0,
            grid=grid,
            in_specs=[pl.BlockSpec((tile_r, lane), lambda i: (i, 0))],
            out_specs=pl.BlockSpec((tile_r, lane), lambda i: (i, 0)),
        ),
        compiler_params=pltpu.CompilerParams(
            dimension_semantics=("parallel",),
            vmem_limit_bytes=int(min(vmem_cap // 2, 4 * block_bytes + (8 << 20))),
        ),
    )(x2)


def h_sigmoid(x):
    """Elementwise hard-sigmoid (relu6(x+3)/6) via a Pallas TPU kernel."""
    orig_shape = x.shape
    dtype = x.dtype
    if not jnp.issubdtype(dtype, jnp.floating):
        raise TypeError(f"h_sigmoid expects a floating dtype, got {dtype}")
    total = int(math.prod(orig_shape)) if orig_shape else 1
    if total == 0:
        return x

    flat = x.reshape(total)   # contiguous reshape: metadata-only, no HBM copy

    lane = next((c for c in _LANE_CANDIDATES if total % c == 0), None)
    if lane is not None:
        # Common path: lane-dense 2-D view, zero host-side pad/slice passes.
        out2 = _launch(flat.reshape(total // lane, lane), dtype)
        return out2.reshape(orig_shape)

    # Fallback: total has no multiple-of-128 divisor -> pad the tail.
    # TODO(synk): this fallback pays one extra HBM pass for the pad and one for
    # the slice; avoid by fusing into the producer or choosing friendlier shapes.
    lane = _FALLBACK_LANE
    rows = pl.cdiv(total, lane)
    padded = rows * lane
    flat = jnp.pad(flat, (0, padded - total))
    out2 = _launch(flat.reshape(rows, lane), dtype)
    return out2.reshape(padded)[:total].reshape(orig_shape)


def h_sigmoid_ref(x):
    return jnp.clip(x + 3.0, 0.0, 6.0) / 6.0


if __name__ == "__main__":
    key = jax.random.PRNGKey(0)
    # NCHW, like the PyTorch module would receive.
    x = jax.random.normal(key, (2, 4, 16, 16), dtype=jnp.float32) * 4.0

    y = h_sigmoid(x)
    y = jax.block_until_ready(y)

    y_ref = h_sigmoid_ref(x)
    assert y.shape == x.shape and y.dtype == x.dtype
    assert jnp.allclose(y, y_ref, atol=1e-6), "mismatch vs reference"

    print("KERNEL_OK")
</pallas_src>

<mosaic_0001>
module attributes {stable_mosaic.version = 11 : i64} {
  func.func @_h_sigmoid_kernel(%arg0: i32, %arg1: memref<1x2048xf32, #tpu.memory_space<vmem>>, %arg2: memref<1x2048xf32, #tpu.memory_space<vmem>>) attributes {dimension_semantics = [#tpu.dimension_semantics<parallel>], iteration_bounds = array<i64: 1>, scalar_prefetch = 0 : i64, scratch_operands = 0 : i64, tpu.core_type = #tpu.core_type<tc>, window_params = [{transform_indices = @transform_0, window_bounds = array<i64: 1, 2048>}, {transform_indices = @transform_1, window_bounds = array<i64: 1, 2048>}]} {
    %c0 = arith.constant 0 : index
    %c0_0 = arith.constant 0 : index
    %0 = vector.load %arg1[%c0, %c0_0] : memref<1x2048xf32, #tpu.memory_space<vmem>>, vector<1x2048xf32>
    %cst = arith.constant 3.000000e+00 : f32
    %1 = vector.broadcast %cst : f32 to vector<1x2048xf32>
    %2 = arith.addf %0, %1 : vector<1x2048xf32>
    %cst_1 = arith.constant 0.000000e+00 : f32
    %cst_2 = arith.constant 6.000000e+00 : f32
    %3 = vector.broadcast %cst_1 : f32 to vector<1x2048xf32>
    %4 = arith.maximumf %3, %2 : vector<1x2048xf32>
    %5 = vector.broadcast %cst_2 : f32 to vector<1x2048xf32>
    %6 = arith.minimumf %5, %4 : vector<1x2048xf32>
    %cst_3 = arith.constant 0.166666672 : f32
    %7 = vector.broadcast %cst_3 : f32 to vector<1x2048xf32>
    %8 = arith.mulf %6, %7 : vector<1x2048xf32>
    %c0_4 = arith.constant 0 : index
    %c0_5 = arith.constant 0 : index
    %9 = vector.load %arg2[%c0_4, %c0_5] : memref<1x2048xf32, #tpu.memory_space<vmem>>, vector<1x2048xf32>
    tpu.vector_store %arg2[%c0_4, %c0_5], %8 {strides = array<i32>} : memref<1x2048xf32, #tpu.memory_space<vmem>>, vector<1x2048xf32>,
    return
  }
  func.func @transform_0(%arg0: i32) -> (i32, i32) {
    %c0_i32 = arith.constant 0 : i32
    %c0_i32_0 = arith.constant 0 : i32
    return %arg0, %c0_i32 : i32, i32
  }
  func.func @transform_1(%arg0: i32) -> (i32, i32) {
    %c0_i32 = arith.constant 0 : i32
    %c0_i32_0 = arith.constant 0 : i32
    return %arg0, %c0_i32 : i32, i32
  }
}

</mosaic_0001>

<bundles_post_ra>
// kernel: tpu_custom_call.1
= control target key start
LH: loop header
LB: loop body
LE: loop exit
PB: predicated region body
PF: predicated region fallthrough
CT: control target
= control target key end

     0   :  { %6 = vsyncpa [#allocation3], 0  ;;  %s124_s0 = inlined_call_operand.hbm [shape: f32[1,2048], index: 0, kind: input, shape index: {}]   ;;  %s125_s1 = inlined_call_operand.hbm [shape: f32[1,2048], index: 1, kind: output, shape index: {}]  }
   0x1   :  { %7 = vsyncpa [#allocation4], 0  ;;  %s13_s8 = sshll.u32 %s124_s0, 4  ;;  %s106_s9 = smov [#allocation2]   ;;  %s14_s8 = int_to_ptr.hbm [resolvable:$true] %s13_s8 }
   0x2   :  { %s15_s10 = sshll.u32 %s106_s9, 4  ;;  %s16_s10 = int_to_ptr.vmem [resolvable:$true] %s15_s10 }
   0x3   :  { %18 = dma.hbm_to_vmem [thread:$0]  %s14_s8, 256, %s16_s10, [#allocation3]  }
   0x4   :  { %102 = dma.done.wait [#allocation3], 256  }
   0x5   :  { %103 = vsyncadd [#allocation3], 4294967040  ;;  %v23_v0 = vld [vmem:[#allocation2] sm:$0xff]  ;;  %v24_v1 = vld [vmem:[#allocation2 + $0x8] sm:$0xff]  ;;  %s107_s11 = smov [#allocation5]   ;;  %s42_s0 = sshll.u32 %s125_s1, 4  ;;  %s43_s0 = int_to_ptr.hbm [resolvable:$true] %s42_s0 }
   0x6   :  { %v25_v2 = vadd.f32 3.0, %v23_v0  ;;  %v26_v3 = vadd.f32 3.0, %v24_v1  ;;  %s40_s12 = sshll.u32 %s107_s11, 4  ;;  %s41_s12 = int_to_ptr.vmem [resolvable:$true] %s40_s12 }
   0x8   :  { %v27_v4 = vmax.f32 %v25_v2, 0.0  ;;  %v28_v5 = vmax.f32 %v26_v3, 0.0 }
   0xa   :  { %v29_v6 = vmin.f32 %v27_v4, 6.0  ;;  %v30_v7 = vmin.f32 %v28_v5, 6.0 }
   0xc   :  { %v31_v8 = vmul.f32 0.16666667, %v29_v6  ;;  %v32_v9 = vmul.f32 0.16666667, %v30_v7 }
   0xe   :  { %33 = vst [vmem:[#allocation5] sm:$0xff] %v31_v8 }
   0xf   :  { %34 = vst [vmem:[#allocation5 + $0x8] sm:$0xff] %v32_v9 }
  0x10   :  { %45 = dma.vmem_to_hbm [thread:$0]  %s41_s12, 256, %s43_s0, [#allocation4]  }
  0x11   :  { %104 = dma.done.wait [#allocation4], 256  }
  0x12   :  { %105 = vsyncadd [#allocation4], 4294967040 }
  0x13   :  { %50 = vsyncpa [#allocation3], 1 }
  0x14   :  { %51 = vsyncpa [#allocation4], 1 }

</bundles_post_ra>
